<compile_context>
chip_gen: v5e
topology: v5e:2x2
jax: 0.10.0
libtpu: 0.0.40
codegen_flags: <defaults>
</compile_context>

<pallas_src>
import functools

import jax
import jax.numpy as jnp
import numpy as np
from jax.experimental import pallas as pl
from jax.experimental.pallas import tpu as pltpu

BN_EPS = 1e-5
LRELU_SLOPE = 0.2


def _round_up(a, b):
    return (a + b - 1) // b * b


def _conv_bn_lrelu_kernel(p_ref, w_ref, g_ref, b_ref, o_ref,
                          sum_ref, sq_ref, *, inv_m):
    """Two-phase fused conv(matmul) + training-mode BatchNorm + LeakyReLU.

    grid = (2, n_tiles); phase 0 accumulates stats, phase 1 normalizes.

    p_ref:   (tm, K_pad)    bf16 im2col patch tile
    w_ref:   (K_pad, C_pad) bf16 reshaped conv weight (zero-padded)
    g_ref:   (1, C_pad)     f32 BN gamma (zero-padded)
    b_ref:   (1, C_pad)     f32 BN beta  (zero-padded)
    o_ref:   (tm, C_pad)    f32 activated output tile (lane-dense)
    sum_ref: (1, C_pad)     f32 scratch: per-channel sum of y
    sq_ref:  (1, C_pad)     f32 scratch: per-channel sum of y*y
    """
    phase = pl.program_id(0)
    tile = pl.program_id(1)

    # Conv as a bf16 MXU matmul with f32 accumulation (needed in both phases).
    y = jnp.dot(p_ref[...], w_ref[...], preferred_element_type=jnp.float32)

    @pl.when(jnp.logical_and(phase == 0, tile == 0))
    def _init():
        sum_ref[...] = jnp.zeros_like(sum_ref)
        sq_ref[...] = jnp.zeros_like(sq_ref)

    @pl.when(phase == 0)
    def _stats():
        # Padded rows are exactly zero -> contribute nothing to either sum.
        sum_ref[...] += jnp.sum(y, axis=0, keepdims=True)
        sq_ref[...] += jnp.sum(y * y, axis=0, keepdims=True)

    @pl.when(phase == 1)
    def _apply():
        mean = sum_ref[...] * inv_m
        var = sq_ref[...] * inv_m - mean * mean      # biased variance
        inv_std = jax.lax.rsqrt(var + BN_EPS)
        scale = g_ref[...] * inv_std                 # (1, C_pad)
        shift = b_ref[...] - mean * scale            # (1, C_pad)
        z = y * scale + shift
        o_ref[...] = jnp.where(z >= 0.0, z, LRELU_SLOPE * z)


def _im2col_k4s2p1(x):
    """x: (N, Cin, H, W) -> patches (N*Ho*Wo, Cin*16) for k=4, s=2, p=1."""
    N, Cin, H, W = x.shape
    Ho, Wo = H // 2, W // 2
    xp = jnp.pad(x, ((0, 0), (0, 0), (1, 1), (1, 1)))
    cols = []
    for kh in range(4):
        for kw in range(4):
            cols.append(xp[:, :, kh:kh + 2 * Ho:2, kw:kw + 2 * Wo:2])  # (N,Cin,Ho,Wo)
    # (N, Cin, KH*KW, Ho, Wo), (kh, kw) flattened row-major -> matches
    # weight.reshape(Cout, Cin*KH*KW) column ordering.
    pat = jnp.stack(cols, axis=2)
    pat = pat.transpose(0, 3, 4, 1, 2).reshape(N * Ho * Wo, Cin * 16)
    return pat, (N, Ho, Wo)


@functools.partial(jax.jit, static_argnames=("tile_m",))
def conv_block_down(x, weight, gamma, beta, tile_m=1024):
    """Forward of conv_block('down'): x (N,Cin,H,W) -> (N,Cout,H/2,W/2)."""
    N, Cin, H, W = x.shape
    Cout = weight.shape[0]

    # bf16 operands for the MXU (halves patch HBM traffic too).
    x_bf = x.astype(jnp.bfloat16)
    patches, (_, Ho, Wo) = _im2col_k4s2p1(x_bf)
    M, K = patches.shape

    # Lane/sublane-friendly padding.
    K_pad = _round_up(K, 128)
    C_pad = _round_up(Cout, 128)
    tm = min(tile_m, _round_up(M, 16))
    M_pad = _round_up(M, tm)
    n_tiles = M_pad // tm

    patches_p = jnp.pad(patches, ((0, M_pad - M), (0, K_pad - K)))
    w2d = weight.reshape(Cout, K).T.astype(jnp.bfloat16)          # (K, Cout)
    w2d_p = jnp.pad(w2d, ((0, K_pad - K), (0, C_pad - Cout)))
    gamma_p = jnp.pad(gamma.astype(jnp.float32).reshape(1, Cout),
                      ((0, 0), (0, C_pad - Cout)))
    beta_p = jnp.pad(beta.astype(jnp.float32).reshape(1, Cout),
                     ((0, 0), (0, C_pad - Cout)))

    kernel = functools.partial(_conv_bn_lrelu_kernel, inv_m=1.0 / float(M))

    out_flat = pl.pallas_call(
        kernel,
        out_shape=jax.ShapeDtypeStruct((M_pad, C_pad), jnp.float32),
        grid=(2, n_tiles),
        in_specs=[
            # patches: re-read per tile in both phases (pipelined/double-buffered)
            pl.BlockSpec((tm, K_pad), lambda p, i: (i, 0)),
            # weight / gamma / beta: block index constant -> fetched once, stay resident
            pl.BlockSpec((K_pad, C_pad), lambda p, i: (0, 0)),
            pl.BlockSpec((1, C_pad), lambda p, i: (0, 0)),
            pl.BlockSpec((1, C_pad), lambda p, i: (0, 0)),
        ],
        # During phase 0 (p==0) all iterations map to output block 0 (never
        # written -> no wasted writeback); phase 1 writes block i.
        out_specs=pl.BlockSpec((tm, C_pad), lambda p, i: (i * p, 0)),
        scratch_shapes=[
            pltpu.VMEM((1, C_pad), jnp.float32),   # per-channel sum
            pltpu.VMEM((1, C_pad), jnp.float32),   # per-channel sum of squares
        ],
        compiler_params=pltpu.CompilerParams(
            dimension_semantics=("arbitrary", "arbitrary"),
            vmem_limit_bytes=32 * 1024 * 1024,
        ),
    )(patches_p, w2d_p, gamma_p, beta_p)

    out = out_flat[:M, :Cout].reshape(N, Ho, Wo, Cout)
    return out.transpose(0, 3, 1, 2)   # NCHW to match the PyTorch module


def _reference(x, weight, gamma, beta, matmul_dtype=jnp.float32):
    """Plain-JAX reference (conv + training-mode BN + LeakyReLU)."""
    y = jax.lax.conv_general_dilated(
        x.astype(matmul_dtype), weight.astype(matmul_dtype),
        window_strides=(2, 2), padding=[(1, 1), (1, 1)],
        dimension_numbers=("NCHW", "OIHW", "NCHW"),
        preferred_element_type=jnp.float32)
    mean = jnp.mean(y, axis=(0, 2, 3), keepdims=True)
    var = jnp.mean((y - mean) ** 2, axis=(0, 2, 3), keepdims=True)
    y_hat = (y - mean) / jnp.sqrt(var + BN_EPS)
    z = y_hat * gamma.reshape(1, -1, 1, 1) + beta.reshape(1, -1, 1, 1)
    return jnp.where(z >= 0, z, LRELU_SLOPE * z)


if __name__ == "__main__":
    # conv_block(inner_nc=4, outer_nc=8, part_name='down')  (BatchNorm => no conv bias)
    inner_nc, outer_nc = 4, 8
    N, H, W = 2, 16, 16

    key = jax.random.PRNGKey(0)
    kx, kw = jax.random.split(key)
    x = jax.random.normal(kx, (N, inner_nc, H, W), dtype=jnp.float32)
    weight = jax.random.normal(kw, (outer_nc, inner_nc, 4, 4), dtype=jnp.float32) * 0.1
    gamma = jnp.ones((outer_nc,), dtype=jnp.float32)   # BatchNorm2d default init
    beta = jnp.zeros((outer_nc,), dtype=jnp.float32)

    out = conv_block_down(x, weight, gamma, beta)
    jax.block_until_ready(out)
    assert out.shape == (N, outer_nc, H // 2, W // 2), out.shape

    # Precision-matched check (bf16 matmul operands, f32 accumulation).
    ref_bf16 = _reference(x, weight, gamma, beta, matmul_dtype=jnp.bfloat16)
    np.testing.assert_allclose(np.asarray(out), np.asarray(ref_bf16),
                               rtol=2e-3, atol=2e-3)

    # Semantics check against the full-f32 PyTorch-equivalent forward
    # (looser tolerance accounts for bf16 MXU operands).
    ref_f32 = _reference(x, weight, gamma, beta, matmul_dtype=jnp.float32)
    np.testing.assert_allclose(np.asarray(out), np.asarray(ref_f32),
                               rtol=5e-2, atol=5e-2)

    print("KERNEL_OK")
</pallas_src>

<mosaic_0001>
module attributes {stable_mosaic.version = 11 : i64} {
  func.func @_conv_bn_lrelu_kernel(%arg0: i32, %arg1: i32, %arg2: memref<128x128xbf16, #tpu.memory_space<vmem>>, %arg3: memref<128x128xbf16, #tpu.memory_space<vmem>>, %arg4: memref<1x128xf32, #tpu.memory_space<vmem>>, %arg5: memref<1x128xf32, #tpu.memory_space<vmem>>, %arg6: memref<128x128xf32, #tpu.memory_space<vmem>>, %arg7: memref<1x128xf32, #tpu.memory_space<vmem>>, %arg8: memref<1x128xf32, #tpu.memory_space<vmem>>) attributes {dimension_semantics = [#tpu.dimension_semantics<arbitrary>, #tpu.dimension_semantics<arbitrary>], iteration_bounds = array<i64: 2, 1>, scalar_prefetch = 0 : i64, scratch_operands = 2 : i64, tpu.core_type = #tpu.core_type<tc>, window_params = [{transform_indices = @transform_0, window_bounds = array<i64: 128, 128>}, {pipeline_mode = #tpu.pipeline_mode<synchronous>, transform_indices = @transform_1, window_bounds = array<i64: 128, 128>}, {pipeline_mode = #tpu.pipeline_mode<synchronous>, transform_indices = @transform_2, window_bounds = array<i64: 1, 128>}, {pipeline_mode = #tpu.pipeline_mode<synchronous>, transform_indices = @transform_3, window_bounds = array<i64: 1, 128>}, {transform_indices = @transform_4, window_bounds = array<i64: 128, 128>}]} {
    %c0 = arith.constant 0 : index
    %c0_0 = arith.constant 0 : index
    %0 = vector.load %arg2[%c0, %c0_0] : memref<128x128xbf16, #tpu.memory_space<vmem>>, vector<128x128xbf16>
    %c0_1 = arith.constant 0 : index
    %c0_2 = arith.constant 0 : index
    %1 = vector.load %arg3[%c0_1, %c0_2] : memref<128x128xbf16, #tpu.memory_space<vmem>>, vector<128x128xbf16>
    %cst = arith.constant dense<0.000000e+00> : vector<128x128xf32>
    %2 = tpu.matmul %0, %1, %cst {dimension_numbers = #tpu.dot_dimension_numbers<[1], [0], [0], [1], [0, 0, 1, 1], [], []>} : vector<128x128xbf16>, vector<128x128xbf16>, vector<128x128xf32> -> vector<128x128xf32>
    %c0_i32 = arith.constant 0 : i32
    %3 = arith.cmpi eq, %arg0, %c0_i32 : i32
    %c0_i32_3 = arith.constant 0 : i32
    %4 = arith.cmpi eq, %arg1, %c0_i32_3 : i32
    %5 = arith.andi %3, %4 : i1
    %6 = arith.extui %5 : i1 to i32
    %c0_i32_4 = arith.constant 0 : i32
    %7 = arith.cmpi ne, %6, %c0_i32_4 : i32
    scf.if %7 {
      %cst_8 = arith.constant 0.000000e+00 : f32
      %14 = vector.broadcast %cst_8 : f32 to vector<1x128xf32>
      %c0_9 = arith.constant 0 : index
      %c0_10 = arith.constant 0 : index
      %15 = vector.load %arg7[%c0_9, %c0_10] : memref<1x128xf32, #tpu.memory_space<vmem>>, vector<1x128xf32>
      tpu.vector_store %arg7[%c0_9, %c0_10], %14 {strides = array<i32>} : memref<1x128xf32, #tpu.memory_space<vmem>>, vector<1x128xf32>,
      %cst_11 = arith.constant 0.000000e+00 : f32
      %16 = vector.broadcast %cst_11 : f32 to vector<1x128xf32>
      %c0_12 = arith.constant 0 : index
      %c0_13 = arith.constant 0 : index
      %17 = vector.load %arg8[%c0_12, %c0_13] : memref<1x128xf32, #tpu.memory_space<vmem>>, vector<1x128xf32>
      tpu.vector_store %arg8[%c0_12, %c0_13], %16 {strides = array<i32>} : memref<1x128xf32, #tpu.memory_space<vmem>>, vector<1x128xf32>,
    } else {
    }
    %c0_i32_5 = arith.constant 0 : i32
    %8 = arith.cmpi eq, %arg0, %c0_i32_5 : i32
    %9 = arith.extui %8 : i1 to i32
    %c0_i32_6 = arith.constant 0 : i32
    %10 = arith.cmpi ne, %9, %c0_i32_6 : i32
    scf.if %10 {
      %c0_8 = arith.constant 0 : index
      %c0_9 = arith.constant 0 : index
      %14 = vector.load %arg7[%c0_8, %c0_9] : memref<1x128xf32, #tpu.memory_space<vmem>>, vector<1x128xf32>
      %cst_10 = arith.constant dense<0.000000e+00> : vector<128xf32>
      %15 = vector.multi_reduction <add>, %2, %cst_10 [0] : vector<128x128xf32> to vector<128xf32>
      %16 = vector.shape_cast %15 : vector<128xf32> to vector<1x128xf32>
      %17 = arith.addf %14, %16 : vector<1x128xf32>
      %c0_11 = arith.constant 0 : index
      %c0_12 = arith.constant 0 : index
      %18 = vector.load %arg7[%c0_11, %c0_12] : memref<1x128xf32, #tpu.memory_space<vmem>>, vector<1x128xf32>
      tpu.vector_store %arg7[%c0_11, %c0_12], %17 {strides = array<i32>} : memref<1x128xf32, #tpu.memory_space<vmem>>, vector<1x128xf32>,
      %c0_13 = arith.constant 0 : index
      %c0_14 = arith.constant 0 : index
      %19 = vector.load %arg8[%c0_13, %c0_14] : memref<1x128xf32, #tpu.memory_space<vmem>>, vector<1x128xf32>
      %20 = arith.mulf %2, %2 : vector<128x128xf32>
      %cst_15 = arith.constant dense<0.000000e+00> : vector<128xf32>
      %21 = vector.multi_reduction <add>, %20, %cst_15 [0] : vector<128x128xf32> to vector<128xf32>
      %22 = vector.shape_cast %21 : vector<128xf32> to vector<1x128xf32>
      %23 = arith.addf %19, %22 : vector<1x128xf32>
      %c0_16 = arith.constant 0 : index
      %c0_17 = arith.constant 0 : index
      %24 = vector.load %arg8[%c0_16, %c0_17] : memref<1x128xf32, #tpu.memory_space<vmem>>, vector<1x128xf32>
      tpu.vector_store %arg8[%c0_16, %c0_17], %23 {strides = array<i32>} : memref<1x128xf32, #tpu.memory_space<vmem>>, vector<1x128xf32>,
    } else {
    }
    %c1_i32 = arith.constant 1 : i32
    %11 = arith.cmpi eq, %arg0, %c1_i32 : i32
    %12 = arith.extui %11 : i1 to i32
    %c0_i32_7 = arith.constant 0 : i32
    %13 = arith.cmpi ne, %12, %c0_i32_7 : i32
    scf.if %13 {
      %c0_8 = arith.constant 0 : index
      %c0_9 = arith.constant 0 : index
      %14 = vector.load %arg7[%c0_8, %c0_9] : memref<1x128xf32, #tpu.memory_space<vmem>>, vector<1x128xf32>
      %cst_10 = arith.constant 7.812500e-03 : f32
      %15 = vector.broadcast %cst_10 : f32 to vector<1x128xf32>
      %16 = arith.mulf %14, %15 : vector<1x128xf32>
      %c0_11 = arith.constant 0 : index
      %c0_12 = arith.constant 0 : index
      %17 = vector.load %arg8[%c0_11, %c0_12] : memref<1x128xf32, #tpu.memory_space<vmem>>, vector<1x128xf32>
      %cst_13 = arith.constant 7.812500e-03 : f32
      %18 = vector.broadcast %cst_13 : f32 to vector<1x128xf32>
      %19 = arith.mulf %17, %18 : vector<1x128xf32>
      %20 = arith.mulf %16, %16 : vector<1x128xf32>
      %21 = arith.subf %19, %20 : vector<1x128xf32>
      %cst_14 = arith.constant 9.99999974E-6 : f32
      %22 = vector.broadcast %cst_14 : f32 to vector<1x128xf32>
      %23 = arith.addf %21, %22 : vector<1x128xf32>
      %24 = math.rsqrt %23 : vector<1x128xf32>
      %c0_15 = arith.constant 0 : index
      %c0_16 = arith.constant 0 : index
      %25 = vector.load %arg4[%c0_15, %c0_16] : memref<1x128xf32, #tpu.memory_space<vmem>>, vector<1x128xf32>
      %26 = arith.mulf %25, %24 : vector<1x128xf32>
      %c0_17 = arith.constant 0 : index
      %c0_18 = arith.constant 0 : index
      %27 = vector.load %arg5[%c0_17, %c0_18] : memref<1x128xf32, #tpu.memory_space<vmem>>, vector<1x128xf32>
      %28 = arith.mulf %16, %26 : vector<1x128xf32>
      %29 = arith.subf %27, %28 : vector<1x128xf32>
      %30 = vector.broadcast %26 : vector<1x128xf32> to vector<128x128xf32>
      %31 = arith.mulf %2, %30 : vector<128x128xf32>
      %32 = vector.broadcast %29 : vector<1x128xf32> to vector<128x128xf32>
      %33 = arith.addf %31, %32 : vector<128x128xf32>
      %cst_19 = arith.constant 0.000000e+00 : f32
      %34 = vector.broadcast %cst_19 : f32 to vector<128x128xf32>
      %35 = arith.cmpf oge, %33, %34 : vector<128x128xf32>
      %cst_20 = arith.constant 2.000000e-01 : f32
      %36 = vector.broadcast %cst_20 : f32 to vector<128x128xf32>
      %37 = arith.mulf %36, %33 : vector<128x128xf32>
      %38 = arith.select %35, %33, %37 : vector<128x128xi1>, vector<128x128xf32>
      %c0_21 = arith.constant 0 : index
      %c0_22 = arith.constant 0 : index
      %39 = vector.load %arg6[%c0_21, %c0_22] : memref<128x128xf32, #tpu.memory_space<vmem>>, vector<128x128xf32>
      tpu.vector_store %arg6[%c0_21, %c0_22], %38 {strides = array<i32>} : memref<128x128xf32, #tpu.memory_space<vmem>>, vector<128x128xf32>,
    } else {
    }
    return
  }
  func.func @transform_0(%arg0: i32, %arg1: i32) -> (i32, i32) {
    %c0_i32 = arith.constant 0 : i32
    %c0_i32_0 = arith.constant 0 : i32
    return %arg1, %c0_i32 : i32, i32
  }
  func.func @transform_1(%arg0: i32, %arg1: i32) -> (i32, i32) {
    %c0_i32 = arith.constant 0 : i32
    %c0_i32_0 = arith.constant 0 : i32
    %c0_i32_1 = arith.constant 0 : i32
    return %c0_i32, %c0_i32_0 : i32, i32
  }
  func.func @transform_2(%arg0: i32, %arg1: i32) -> (i32, i32) {
    %c0_i32 = arith.constant 0 : i32
    %c0_i32_0 = arith.constant 0 : i32
    %c0_i32_1 = arith.constant 0 : i32
    return %c0_i32, %c0_i32_0 : i32, i32
  }
  func.func @transform_3(%arg0: i32, %arg1: i32) -> (i32, i32) {
    %c0_i32 = arith.constant 0 : i32
    %c0_i32_0 = arith.constant 0 : i32
    %c0_i32_1 = arith.constant 0 : i32
    return %c0_i32, %c0_i32_0 : i32, i32
  }
  func.func @transform_4(%arg0: i32, %arg1: i32) -> (i32, i32) {
    %0 = arith.muli %arg1, %arg0 : i32
    %c0_i32 = arith.constant 0 : i32
    %c0_i32_0 = arith.constant 0 : i32
    return %0, %c0_i32 : i32, i32
  }
}

</mosaic_0001>

<bundles_post_ra>
// kernel: conv_block_down.1
= control target key start
LH: loop header
LB: loop body
LE: loop exit
PB: predicated region body
PF: predicated region fallthrough
CT: control target
= control target key end

     0   :  { %s863_s15 = smov 0   ;;  %s865_s16 = smov 0   ;;  %s1131_s0 = inlined_call_operand.vmem [shape: bf16[128,128], index: 0, kind: input, shape index: {}]   ;;  %s1132_s1 = inlined_call_operand.vmem [shape: bf16[128,128], index: 1, kind: input, shape index: {}]   ;;  %s1133_s2 = inlined_call_operand.vmem [shape: f32[1,128], index: 2, kind: input, shape index: {}]   ;;  %s1134_s3 = inlined_call_operand.vmem [shape: f32[1,128], index: 3, kind: input, shape index: {}]   ;;  %s1135_s4 = inlined_call_operand.vmem [shape: f32[128,128], index: 4, kind: output, shape index: {}]  }
   0x1   :  { %s867_s17 = smov 0  }
   0x2 LB: > { %s26_s18 = sadd.s32 1, %s831_s16  ;;  %p673_p0 = scmp.ge.s32.totalorder %s835_s17, 1  ;;  %s835_s17 = sphi %s867_s17, %s14_s17   ;;  %s831_s16 = sphi %s865_s16, %s1137_s16   ;;  %s827_s15 = sphi %s863_s15, %s1136_s15  }
   0x3   : > { %p28_p1 = scmp.ge.s32.totalorder %s26_s18, 2  ;;  %p177_p2 = scmp.lt.s32.totalorder %s835_s17, 3 }
   0x5   : > { %s1139_s18 = smov (%p28_p1, %s26_s18), 0  ;;  %p178_p3 = pnand %p673_p0, %p177_p2 }
   0x6   : > { %p395_p4 = scmp.eq.s32.totalorder (!%p178_p3), %s827_s15, 0 }
   0x7   : > { %181 = sbr.rel (%p178_p3) target bundleno = 319 (0x13f), region = 36 }
   0xc   : > { %v760_v0 = vld [vmem:[%s1132_s1 + $0x38] sm:$0xff]  ;;  %v759_v1 = vld [vmem:[%s1132_s1 + $0x30] sm:$0xff]  ;;  %v758_v2 = vld [vmem:[%s1132_s1 + $0x28] sm:$0xff]  ;;  %v837_v32 = vmov (%p395_p4), 0.0  }
   0xd   : > { %346 = vmatpush.bf16.msra.mxu0 %v760_v0  ;;  %762 = vmatpush.bf16.msra.mxu1 %v760_v0  ;;  %v757_v3 = vld [vmem:[%s1132_s1 + $0x20] sm:$0xff]  ;;  %v756_v4 = vld [vmem:[%s1132_s1 + $0x18] sm:$0xff]  ;;  %v755_v5 = vld [vmem:[%s1132_s1 + $0x10] sm:$0xff]  ;;  %401 = vst [vmem:[#allocation2] sm:$0x1] (%p395_p4), %v837_v32 }
   0xe   : > { %763 = vmatpush.bf16.msra.mxu2 %v760_v0  ;;  %764 = vmatpush.bf16.msra.mxu3 %v760_v0  ;;  %v754_v6 = vld [vmem:[%s1132_s1 + $0x8] sm:$0xff]  ;;  %v753_v7 = vld [vmem:[%s1132_s1] sm:$0xff]  ;;  %v747_v9 = vld [vmem:[%s1131_s0 + $0x10] sm:$0xff]  ;;  %402 = vst [vmem:[#allocation3] sm:$0x1] (%p395_p4), %v837_v32 }
   0xf   : > { %v745_v8 = vld [vmem:[%s1131_s0] sm:$0xff]  ;;  %v751_v11 = vld [vmem:[%s1131_s0 + $0x30] sm:$0xff]  ;;  %v746_v12 = vld [vmem:[%s1131_s0 + $0x8] sm:$0xff] }
  0x10   : > { %v749_v10 = vld [vmem:[%s1131_s0 + $0x20] sm:$0xff]  ;;  %v748_v13 = vld [vmem:[%s1131_s0 + $0x18] sm:$0xff]  ;;  %v750_v14 = vld [vmem:[%s1131_s0 + $0x28] sm:$0xff] }
  0x11   : > { %347 = vmatpush.bf16.msra.mxu0 %v759_v1  ;;  %765 = vmatpush.bf16.msra.mxu1 %v759_v1  ;;  %v752_v15 = vld [vmem:[%s1131_s0 + $0x38] sm:$0xff] }
  0x12   : > { %766 = vmatpush.bf16.msra.mxu2 %v759_v1  ;;  %767 = vmatpush.bf16.msra.mxu3 %v759_v1 }
  0x15   : > { %348 = vmatpush.bf16.msra.mxu0 %v758_v2  ;;  %768 = vmatpush.bf16.msra.mxu1 %v758_v2 }
  0x16   : > { %769 = vmatpush.bf16.msra.mxu2 %v758_v2  ;;  %770 = vmatpush.bf16.msra.mxu3 %v758_v2 }
  0x19   : > { %349 = vmatpush.bf16.msra.mxu0 %v757_v3  ;;  %771 = vmatpush.bf16.msra.mxu1 %v757_v3 }
  0x1a   : > { %772 = vmatpush.bf16.msra.mxu2 %v757_v3  ;;  %773 = vmatpush.bf16.msra.mxu3 %v757_v3 }
  0x1d   : > { %350 = vmatpush.bf16.msra.mxu0 %v756_v4  ;;  %774 = vmatpush.bf16.msra.mxu1 %v756_v4 }
  0x1e   : > { %775 = vmatpush.bf16.msra.mxu2 %v756_v4  ;;  %776 = vmatpush.bf16.msra.mxu3 %v756_v4 }
  0x21   : > { %351 = vmatpush.bf16.msra.mxu0 %v755_v5  ;;  %777 = vmatpush.bf16.msra.mxu1 %v755_v5 }
  0x22   : > { %778 = vmatpush.bf16.msra.mxu2 %v755_v5  ;;  %779 = vmatpush.bf16.msra.mxu3 %v755_v5 }
  0x25   : > { %352 = vmatpush.bf16.msra.mxu0 %v754_v6  ;;  %780 = vmatpush.bf16.msra.mxu1 %v754_v6 }
  0x26   : > { %781 = vmatpush.bf16.msra.mxu2 %v754_v6  ;;  %782 = vmatpush.bf16.msra.mxu3 %v754_v6 }
  0x29   : > { %353 = vmatpush.bf16.msra.mxu0 %v753_v7  ;;  %783 = vmatpush.bf16.msra.mxu1 %v753_v7 }
  0x2a   : > { %784 = vmatpush.bf16.msra.mxu2 %v753_v7  ;;  %785 = vmatpush.bf16.msra.mxu3 %v753_v7 }
  0x2c   : > { %354 = vmatmul.bf16.vlgmr.msra.gmra.mxu0 %v745_v8  ;;  %364 = vmatmul.bf16.vlgmr.msra.gmra.mxu1 %v747_v9 }
  0x2d   : > { %374 = vmatmul.bf16.vlgmr.msra.gmra.mxu2 %v749_v10  ;;  %384 = vmatmul.bf16.vlgmr.msra.gmra.mxu3 %v751_v11 }
  0x3c   : > { %359 = vmatmul.bf16.gmra.mxu0 %v746_v12  ;;  %369 = vmatmul.bf16.gmra.mxu1 %v748_v13 }
  0x3d   : > { %379 = vmatmul.bf16.gmra.mxu2 %v750_v14  ;;  %389 = vmatmul.bf16.gmra.mxu3 %v752_v15 }
  0xa9   : > { %v932_v16 = vpop.f32.mrf.mxu0  ;;  %v934_v17 = vpop.f32.mrf.mxu1 }
  0xb0   : > { %v936_v18 = vpop.f32.mrf.mxu2  ;;  %v938_v19 = vpop.f32.mrf.mxu3 }
  0xb1   : > { %v940_v20 = vpop.f32.mrf.mxu0  ;;  %v942_v21 = vpop.f32.mrf.mxu1 }
  0xb8   : > { %v944_v22 = vpop.f32.mrf.mxu2  ;;  %v946_v23 = vpop.f32.mrf.mxu3 }
  0xb9   : > { %v948_v24 = vpop.f32.mrf.mxu0  ;;  %v950_v25 = vpop.f32.mrf.mxu1 }
  0xc0   : > { %v952_v26 = vpop.f32.mrf.mxu2  ;;  %v954_v27 = vpop.f32.mrf.mxu3 }
  0xc1   : > { %v956_v28 = vpop.f32.mrf.mxu0  ;;  %v958_v29 = vpop.f32.mrf.mxu1 }
  0xc4   : > { %400 = sbr.rel (!%p395_p4) target bundleno = 201 (0xc9), region = 40 }
  0xc8   : > { %v960_v30 = vpop.f32.mrf.mxu2  ;;  %v962_v31 = vpop.f32.mrf.mxu3 }
  0xc9 PF: > { %p739_p5 = scmp.ne.s32.totalorder %s827_s15, 0 }
  0xcb   : > { %405 = sbr.rel (%p739_p5) target bundleno = 255 (0xff), region = 44 }
  0xd0   : > { %v407_v33 = vadd.f32 %v940_v20, %v932_v16  ;;  %v431_v34 = vmul.f32 %v932_v16, %v932_v16  ;;  %v432_v35 = vmul.f32 %v940_v20, %v940_v20  ;;  %v433_v37 = vmul.f32 %v948_v24, %v948_v24 }
  0xd1   : > { %v434_v39 = vmul.f32 %v956_v28, %v956_v28  ;;  %v435_v42 = vmul.f32 %v934_v17, %v934_v17  ;;  %v436_v45 = vmul.f32 %v942_v21, %v942_v21  ;;  %v437_v48 = vmul.f32 %v950_v25, %v950_v25 }
  0xd2   : > { %v408_v36 = vadd.f32 %v407_v33, %v948_v24  ;;  %v447_v40 = vadd.f32 %v432_v35, %v431_v34  ;;  %v438_v51 = vmul.f32 %v958_v29, %v958_v29  ;;  %v439_v54 = vmul.f32 %v936_v18, %v936_v18 }
  0xd3   : > { %v440_v57 = vmul.f32 %v944_v22, %v944_v22  ;;  %v441_v60 = vmul.f32 %v952_v26, %v952_v26  ;;  %v442_v63 = vmul.f32 %v960_v30, %v960_v30  ;;  %v443_v2 = vmul.f32 %v938_v19, %v938_v19 }
  0xd4   : > { %v409_v38 = vadd.f32 %v408_v36, %v956_v28  ;;  %v448_v43 = vadd.f32 %v447_v40, %v433_v37  ;;  %v444_v5 = vmul.f32 %v946_v23, %v946_v23  ;;  %v445_v8 = vmul.f32 %v954_v27, %v954_v27 }
  0xd5   : > { %v446_v11 = vmul.f32 %v962_v31, %v962_v31 }
  0xd6   : > { %v410_v41 = vadd.f32 %v409_v38, %v934_v17  ;;  %v449_v46 = vadd.f32 %v448_v43, %v434_v39  ;;  %v406_v39 = vld [vmem:[#allocation2] sm:$0x1] }
  0xd8   : > { %v411_v44 = vadd.f32 %v410_v41, %v942_v21  ;;  %v450_v49 = vadd.f32 %v449_v46, %v435_v42 }
  0xda   : > { %v412_v47 = vadd.f32 %v411_v44, %v950_v25  ;;  %v451_v52 = vadd.f32 %v450_v49, %v436_v45  ;;  %v430_v44 = vld [vmem:[#allocation3] sm:$0x1] }
  0xdc   : > { %v413_v50 = vadd.f32 %v412_v47, %v958_v29  ;;  %v452_v55 = vadd.f32 %v451_v52, %v437_v48 }
  0xde   : > { %v414_v53 = vadd.f32 %v413_v50, %v936_v18  ;;  %v453_v58 = vadd.f32 %v452_v55, %v438_v51 }
  0xe0   : > { %v415_v56 = vadd.f32 %v414_v53, %v944_v22  ;;  %v454_v61 = vadd.f32 %v453_v58, %v439_v54 }
  0xe2   : > { %v416_v59 = vadd.f32 %v415_v56, %v952_v26  ;;  %v455_v0 = vadd.f32 %v454_v61, %v440_v57 }
  0xe4   : > { %v417_v62 = vadd.f32 %v416_v59, %v960_v30  ;;  %v456_v3 = vadd.f32 %v455_v0, %v441_v60 }
  0xe6   : > { %v418_v1 = vadd.f32 %v417_v62, %v938_v19  ;;  %v457_v6 = vadd.f32 %v456_v3, %v442_v63 }
  0xe8   : > { %v419_v4 = vadd.f32 %v418_v1, %v946_v23  ;;  %v458_v9 = vadd.f32 %v457_v6, %v443_v2 }
  0xea   : > { %v420_v7 = vadd.f32 %v419_v4, %v954_v27  ;;  %v459_v12 = vadd.f32 %v458_v9, %v444_v5 }
  0xec   : > { %v421_v10 = vadd.f32 %v420_v7, %v962_v31  ;;  %v460_v14 = vadd.f32 %v459_v12, %v445_v8 }
  0xee   : > { %v422_v13 = vrot.slane %v421_v10, 4  ;;  %v461_v32 = vadd.f32 %v460_v14, %v446_v11 }
  0xf0   : > { %v423_v15 = vadd.f32 %v422_v13, %v421_v10  ;;  %v462_v34 = vrot.slane %v461_v32, 4 }
  0xf2   : > { %v424_v33 = vrot.slane %v423_v15, 2  ;;  %v463_v36 = vadd.f32 %v462_v34, %v461_v32 }
  0xf4   : > { %v425_v35 = vadd.f32 %v424_v33, %v423_v15  ;;  %v464_v38 = vrot.slane %v463_v36, 2 }
  0xf6   : > { %v426_v37 = vrot.slane %v425_v35, 1  ;;  %v465_v41 = vadd.f32 %v464_v38, %v463_v36 }
  0xf8   : > { %v427_v40 = vadd.f32 %v426_v37, %v425_v35  ;;  %v466_v43 = vrot.slane %v465_v41, 1 }
  0xfa   : > { %v428_v42 = vadd.f32 %v427_v40, %v406_v39  ;;  %v467_v45 = vadd.f32 %v466_v43, %v465_v41 }
  0xfc   : > { %429 = vst [vmem:[#allocation2] sm:$0x1] %v428_v42  ;;  %v468_v46 = vadd.f32 %v467_v45, %v430_v44 }
  0xfe   : > { %469 = vst [vmem:[#allocation3] sm:$0x1] %v468_v46 }
  0xff PF: > { %p740_p6 = scmp.ne.s32.totalorder %s827_s15, 1 }
 0x101   : > { %473 = sbr.rel (%p740_p6) target bundleno = 319 (0x13f), region = 48 }
 0x106   : > { %v474_v47 = vld [vmem:[#allocation2] sm:$0x1]  ;;  %v476_v48 = vld [vmem:[#allocation3] sm:$0x1] }
 0x107   : > { %v475_v49 = vmul.f32 0.0078125, %v474_v47  ;;  %v477_v50 = vmul.f32 0.0078125, %v476_v48  ;;  %v491_v60 = vld [vmem:[%s1133_s2] sm:$0x1] }
 0x108   : > { %v493_v63 = vld [vmem:[%s1134_s3] sm:$0x1] }
 0x109   : > { %v478_v51 = vmul.f32 %v475_v49, %v475_v49 }
 0x10b   : > { %v479_v52 = vsub.f32 %v477_v50, %v478_v51 }
 0x10d   : > { %v480_v53 = vadd.f32 1e-05, %v479_v52 }
 0x10f   : > { %811 = vrsqrt.f32 %v480_v53  ;;  %vm487_vm0 = vweird.f32 %v480_v53 }
 0x115   : > { %v812_v54 = vpop.eup %811 }
 0x116   : > { %v482_v55 = vmul.f32 %v812_v54, %v480_v53  ;;  %vm488_vm1 = vweird.f32 %v812_v54 }
 0x117   : > { %vm489_vm2 = vmor %vm487_vm0, %vm488_vm1 }
 0x118   : > { %v483_v56 = vmul.f32 %v812_v54, %v482_v55 }
 0x11a   : > { %v484_v57 = vmul.f32 0.5, %v483_v56 }
 0x11c   : > { %v485_v58 = vsub.f32 1.5, %v484_v57 }
 0x11e   : > { %v486_v59 = vmul.f32 %v812_v54, %v485_v58 }
 0x120   : > { %v490_v61 = vsel %vm489_vm2, %v812_v54, %v486_v59 }
 0x121   : > { %v492_v62 = vmul.f32 %v491_v60, %v490_v61 }
 0x123   : > { %v494_v0 = vmul.f32 %v492_v62, %v475_v49  ;;  %v1022_v1 = vperm.slane %v492_v62, 0 }
 0x125   : > { %v495_v2 = vsub.f32 %v493_v63, %v494_v0  ;;  %v499_v3 = vmul.f32 %v1022_v1, %v932_v16  ;;  %v500_v4 = vmul.f32 %v1022_v1, %v940_v20  ;;  %v501_v5 = vmul.f32 %v1022_v1, %v948_v24 }
 0x126   : > { %v502_v6 = vmul.f32 %v1022_v1, %v956_v28  ;;  %v503_v7 = vmul.f32 %v1022_v1, %v934_v17  ;;  %v504_v8 = vmul.f32 %v1022_v1, %v942_v21  ;;  %v505_v9 = vmul.f32 %v1022_v1, %v950_v25 }
 0x127   : > { %v1038_v10 = vperm.slane %v495_v2, 0  ;;  %v506_v16 = vmul.f32 %v1022_v1, %v958_v29  ;;  %v507_v20 = vmul.f32 %v1022_v1, %v936_v18  ;;  %v508_v24 = vmul.f32 %v1022_v1, %v944_v22 }
 0x128   : > { %v509_v17 = vmul.f32 %v1022_v1, %v952_v26  ;;  %v510_v21 = vmul.f32 %v1022_v1, %v960_v30  ;;  %v511_v25 = vmul.f32 %v1022_v1, %v938_v19  ;;  %v512_v28 = vmul.f32 %v1022_v1, %v946_v23 }
 0x129   : > { %v518_v29 = vadd.f32 %v1038_v10, %v499_v3  ;;  %v519_v11 = vadd.f32 %v1038_v10, %v500_v4  ;;  %v520_v18 = vadd.f32 %v1038_v10, %v501_v5  ;;  %v521_v22 = vadd.f32 %v1038_v10, %v502_v6 }
 0x12a   : > { %v522_v12 = vadd.f32 %v1038_v10, %v503_v7  ;;  %v523_v26 = vadd.f32 %v1038_v10, %v504_v8  ;;  %v524_v30 = vadd.f32 %v1038_v10, %v505_v9  ;;  %v525_v13 = vadd.f32 %v1038_v10, %v506_v16 }
 0x12b   : > { %vm534_vm3 = vcmp.ge.f32.partialorder %v518_v29, 0.0  ;;  %v550_v19 = vmul.f32 0.2, %v518_v29  ;;  %vm535_vm4 = vcmp.ge.f32.partialorder %v519_v11, 0.0  ;;  %v551_v23 = vmul.f32 0.2, %v519_v11 }
 0x12c   : > { %vm536_vm5 = vcmp.ge.f32.partialorder %v520_v18, 0.0  ;;  %v552_v14 = vmul.f32 0.2, %v520_v18  ;;  %vm537_vm6 = vcmp.ge.f32.partialorder %v521_v22, 0.0  ;;  %v553_v15 = vmul.f32 0.2, %v521_v22 }
 0x12d   : > { %v566_v32 = vsel %vm534_vm3, %v518_v29, %v550_v19  ;;  %v567_v33 = vsel %vm535_vm4, %v519_v11, %v551_v23  ;;  %vm538_vm7 = vcmp.ge.f32.partialorder %v522_v12, 0.0  ;;  %v554_v34 = vmul.f32 0.2, %v522_v12 }
 0x12e   : > { %582 = vst [vmem:[%s1135_s4] sm:$0xff] %v566_v32  ;;  %v568_v35 = vsel %vm536_vm5, %v520_v18, %v552_v14  ;;  %v569_v36 = vsel %vm537_vm6, %v521_v22, %v553_v15  ;;  %vm539_vm8 = vcmp.ge.f32.partialorder %v523_v26, 0.0  ;;  %v555_v37 = vmul.f32 0.2, %v523_v26 }
 0x12f   : > { %583 = vst [vmem:[%s1135_s4 + $0x8] sm:$0xff] %v567_v33  ;;  %v570_v38 = vsel %vm538_vm7, %v522_v12, %v554_v34  ;;  %vm540_vm9 = vcmp.ge.f32.partialorder %v524_v30, 0.0  ;;  %v556_v39 = vmul.f32 0.2, %v524_v30  ;;  %vm541_vm10 = vcmp.ge.f32.partialorder %v525_v13, 0.0 }
 0x130   : > { %584 = vst [vmem:[%s1135_s4 + $0x10] sm:$0xff] %v568_v35  ;;  %v571_v40 = vsel %vm539_vm8, %v523_v26, %v555_v37  ;;  %v557_v41 = vmul.f32 0.2, %v525_v13  ;;  %v526_v42 = vadd.f32 %v1038_v10, %v507_v20  ;;  %v527_v43 = vadd.f32 %v1038_v10, %v508_v24 }
 0x131   : > { %585 = vst [vmem:[%s1135_s4 + $0x18] sm:$0xff] %v569_v36  ;;  %v572_v44 = vsel %vm540_vm9, %v524_v30, %v556_v39  ;;  %v528_v45 = vadd.f32 %v1038_v10, %v509_v17  ;;  %v529_v46 = vadd.f32 %v1038_v10, %v510_v21  ;;  %v530_v47 = vadd.f32 %v1038_v10, %v511_v25 }
 0x132   : > { %586 = vst [vmem:[%s1135_s4 + $0x20] sm:$0xff] %v570_v38  ;;  %v573_v48 = vsel %vm541_vm10, %v525_v13, %v557_v41  ;;  %vm542_vm11 = vcmp.ge.f32.partialorder %v526_v42, 0.0  ;;  %v558_v49 = vmul.f32 0.2, %v526_v42  ;;  %vm543_vm12 = vcmp.ge.f32.partialorder %v527_v43, 0.0 }
 0x133   : > { %587 = vst [vmem:[%s1135_s4 + $0x28] sm:$0xff] %v571_v40  ;;  %v559_v50 = vmul.f32 0.2, %v527_v43  ;;  %vm544_vm13 = vcmp.ge.f32.partialorder %v528_v45, 0.0  ;;  %v560_v51 = vmul.f32 0.2, %v528_v45  ;;  %v531_v52 = vadd.f32 %v1038_v10, %v512_v28 }
 0x134   : > { %588 = vst [vmem:[%s1135_s4 + $0x30] sm:$0xff] %v572_v44  ;;  %v574_v53 = vsel %vm542_vm11, %v526_v42, %v558_v49  ;;  %vm545_vm14 = vcmp.ge.f32.partialorder %v529_v46, 0.0  ;;  %v561_v54 = vmul.f32 0.2, %v529_v46  ;;  %vm546_vm15 = vcmp.ge.f32.partialorder %v530_v47, 0.0 }
 0x135   : > { %589 = vst [vmem:[%s1135_s4 + $0x38] sm:$0xff] %v573_v48  ;;  %v575_v55 = vsel %vm543_vm12, %v527_v43, %v559_v50  ;;  %v576_v56 = vsel %vm544_vm13, %v528_v45, %v560_v51  ;;  %v562_v57 = vmul.f32 0.2, %v530_v47  ;;  %vm547_vm0 = vcmp.ge.f32.partialorder %v531_v52, 0.0 }
 0x136   : > { %590 = vst [vmem:[%s1135_s4 + $0x40] sm:$0xff] %v574_v53  ;;  %v577_v58 = vsel %vm545_vm14, %v529_v46, %v561_v54  ;;  %v563_v59 = vmul.f32 0.2, %v531_v52  ;;  %v513_v60 = vmul.f32 %v1022_v1, %v954_v27  ;;  %v514_v61 = vmul.f32 %v1022_v1, %v962_v31 }
 0x137   : > { %591 = vst [vmem:[%s1135_s4 + $0x48] sm:$0xff] %v575_v55  ;;  %v578_v62 = vsel %vm546_vm15, %v530_v47, %v562_v57 }
 0x138   : > { %592 = vst [vmem:[%s1135_s4 + $0x50] sm:$0xff] %v576_v56  ;;  %v579_v63 = vsel %vm547_vm0, %v531_v52, %v563_v59  ;;  %v532_v0 = vadd.f32 %v1038_v10, %v513_v60  ;;  %v533_v2 = vadd.f32 %v1038_v10, %v514_v61 }
 0x139   : > { %593 = vst [vmem:[%s1135_s4 + $0x58] sm:$0xff] %v577_v58 }
 0x13a   : > { %594 = vst [vmem:[%s1135_s4 + $0x60] sm:$0xff] %v578_v62  ;;  %vm548_vm1 = vcmp.ge.f32.partialorder %v532_v0, 0.0  ;;  %v564_v27 = vmul.f32 0.2, %v532_v0  ;;  %vm549_vm2 = vcmp.ge.f32.partialorder %v533_v2, 0.0 }
 0x13b   : > { %595 = vst [vmem:[%s1135_s4 + $0x68] sm:$0xff] %v579_v63  ;;  %v565_v31 = vmul.f32 0.2, %v533_v2 }
 0x13c   : > { %v580_v1 = vsel %vm548_vm1, %v532_v0, %v564_v27 }
 0x13d   : > { %596 = vst [vmem:[%s1135_s4 + $0x70] sm:$0xff] %v580_v1  ;;  %v581_v3 = vsel %vm549_vm2, %v533_v2, %v565_v31 }
 0x13e   : > { %597 = vst [vmem:[%s1135_s4 + $0x78] sm:$0xff] %v581_v3 }
 0x13f PF: > { %s14_s17 = sadd.s32 1, %s835_s17   ;;  %s1136_s15 = smov %s831_s16 }
 0x140   : > { %p11_p7 = scmp.ge.s32.totalorder %s14_s17, 4   ;;  %s1137_s16 = smov %s1139_s18 }
 0x142   :  { %13 = sbr.rel (!%p11_p7) target bundleno = 2 (0x2), region = 78 }

</bundles_post_ra>
